<compile_context>
chip_gen: v7x
topology: tpu7x:2x2x1
jax: 0.10.0
libtpu: 0.0.40
codegen_flags: <defaults>
</compile_context>

<pallas_src>
import functools

import jax
import jax.numpy as jnp
from jax import lax
from jax.experimental import pallas as pl
from jax.experimental.pallas import tpu as pltpu

LANES = 128
TILE_ROWS = 2048  # 2048 x 128 f32 = 1 MiB per input block


def _wmse_partials_kernel(p_ref, t_ref, w_ref, acc_ref, *,
                          tile_rows, inner_steps, m_rows, need_mask):
    # Zero this core's resident accumulator block at the start of its row range.
    @pl.when(pl.program_id(1) == 0)
    def _():
        acc_ref[...] = jnp.zeros_like(acc_ref)

    p = p_ref[...].astype(jnp.float32)
    t = t_ref[...].astype(jnp.float32)
    w = w_ref[...].astype(jnp.float32)

    d = p - t
    sq = w * d * d  # weights * (pred - target)**2

    if need_mask:
        # Mask rows past the logical end of the array (ragged tail and/or
        # overshoot from the 2-way core split).  Mask both w and scale so all
        # four partials see exact zeros (garbage tail data may contain NaN).
        blk = pl.program_id(0) * inner_steps + pl.program_id(1)
        rows = blk * tile_rows + lax.broadcasted_iota(jnp.int32, p.shape, 0)
        valid = rows < m_rows
        w = jnp.where(valid, w, 0.0)
        scale = jnp.where(valid, sq, 0.0)
    else:
        scale = sq

    pos = (w > 0).astype(jnp.float32)      # torch.gt(weights, 0)
    nz = (scale != 0).astype(jnp.float32)  # torch.nonzero(scale)

    # Sublane-only reductions (VPU); per-lane partials accumulate in VMEM.
    acc_ref[0:1, :] += jnp.sum(scale * pos, axis=0, keepdims=True)
    acc_ref[1:2, :] += jnp.sum(pos, axis=0, keepdims=True)
    acc_ref[2:3, :] += jnp.sum(nz, axis=0, keepdims=True)
    acc_ref[3:4, :] += jnp.sum(scale, axis=0, keepdims=True)


def _wmse_partials(pred, target, weights):
    """Returns (sum_scale_where_w_pos, count_w_pos, count_scale_nz, sum_scale), n."""
    n = pred.size
    p = pred.reshape(-1)
    t = target.reshape(-1)
    w = weights.reshape(-1)

    pad = (-n) % LANES
    if pad:
        # Tiny (<128 elem) zero pad only when numel is not lane-aligned;
        # padded weights are 0 so padded elements contribute to no partial.
        p = jnp.pad(p, (0, pad))
        t = jnp.pad(t, (0, pad))
        w = jnp.pad(w, (0, pad))

    m_rows = (n + pad) // LANES
    p = p.reshape(m_rows, LANES)
    t = t.reshape(m_rows, LANES)
    w = w.reshape(m_rows, LANES)

    tile_rows = TILE_ROWS if m_rows >= TILE_ROWS else m_rows
    grid_m = pl.cdiv(m_rows, tile_rows)
    nsplit = 2 if grid_m >= 2 else 1          # v7x: one accumulator per TensorCore
    inner_steps = pl.cdiv(grid_m, nsplit)
    need_mask = (nsplit * inner_steps * tile_rows) != m_rows
    overshoot = (nsplit * inner_steps) > grid_m

    def in_index_map(c, i):
        blk = c * inner_steps + i
        if overshoot:
            # Fully out-of-range blocks are clamped to the last real block;
            # their contribution is zeroed by the in-kernel row mask.
            blk = jnp.minimum(blk, grid_m - 1)
        return (blk, 0)

    in_spec = pl.BlockSpec((tile_rows, LANES), in_index_map)
    out_spec = pl.BlockSpec((None, 4, LANES), lambda c, i: (c, 0, 0))

    kernel = functools.partial(
        _wmse_partials_kernel,
        tile_rows=tile_rows, inner_steps=inner_steps,
        m_rows=m_rows, need_mask=need_mask)

    acc = pl.pallas_call(
        kernel,
        out_shape=jax.ShapeDtypeStruct((nsplit, 4, LANES), jnp.float32),
        grid_spec=pltpu.PrefetchScalarGridSpec(
            num_scalar_prefetch=0,
            grid=(nsplit, inner_steps),
            in_specs=[in_spec, in_spec, in_spec],
            out_specs=out_spec,
        ),
        compiler_params=pltpu.CompilerParams(
            dimension_semantics=("parallel", "arbitrary")),
    )(p, t, w)

    # Tiny final cross-lane / cross-core reduce outside the kernel.
    partials = jnp.sum(acc, axis=(0, 2))  # (4,)
    return partials[0], partials[1], partials[2], partials[3], n


@jax.jit
def weighted_mse_loss(*args):
    """Matches WeightedMSELoss.forward: args are (pred, target, weights) triplets."""
    loss = jnp.float32(0.0)
    for i in range(0, len(args), 3):
        s_pos, c_pos, c_nz, s_all, n = _wmse_partials(
            args[i], args[i + 1], args[i + 2])
        masked_mean = s_pos / c_pos          # mean over scale[weights > 0]
        full_mean = s_all / jnp.float32(n)   # mean over all of scale
        loss = loss + jnp.where(c_nz > 0, masked_mean, full_mean)
    return loss


def _reference(*args):
    """Pure-JAX reference of the PyTorch semantics, for verification."""
    loss = jnp.float32(0.0)
    for i in range(0, len(args), 3):
        p, t, w = (a.astype(jnp.float32) for a in (args[i], args[i + 1], args[i + 2]))
        scale = w * (p - t) ** 2
        any_nz = jnp.count_nonzero(scale) != 0
        pos = w > 0
        masked_mean = jnp.sum(jnp.where(pos, scale, 0.0)) / jnp.sum(pos.astype(jnp.float32))
        loss = loss + jnp.where(any_nz, masked_mean, jnp.mean(scale))
    return loss


if __name__ == "__main__":
    key = jax.random.PRNGKey(0)
    ks = jax.random.split(key, 10)

    shape = (2, 4, 16, 16)  # NCHW, small synthetic volume

    # Triplet 1: dense weights with ~half the voxels masked out (weights == 0).
    pred1 = jax.random.normal(ks[0], shape, jnp.float32)
    targ1 = jax.random.normal(ks[1], shape, jnp.float32)
    w1 = jax.random.uniform(ks[2], shape, jnp.float32) * (
        jax.random.uniform(ks[3], shape) > 0.5).astype(jnp.float32)

    # Triplet 2: all-zero weights -> scale all-zero -> loss branch = mean(scale) = 0.
    pred2 = jax.random.normal(ks[4], shape, jnp.float32)
    targ2 = jax.random.normal(ks[5], shape, jnp.float32)
    w2 = jnp.zeros(shape, jnp.float32)

    out = jax.block_until_ready(
        weighted_mse_loss(pred1, targ1, w1, pred2, targ2, w2))
    ref = jax.block_until_ready(
        _reference(pred1, targ1, w1, pred2, targ2, w2))
    assert jnp.allclose(out, ref, rtol=1e-5, atol=1e-6), (out, ref)

    # Secondary check: big enough (m_rows=4320 > TILE_ROWS) to exercise the
    # multi-step grid, the 2-way core split, the clamped overshoot block and
    # the in-kernel tail masking on real hardware.
    big = (2, 4, 288, 240)
    pred3 = jax.random.normal(ks[6], big, jnp.float32)
    targ3 = jax.random.normal(ks[7], big, jnp.float32)
    w3 = jax.random.uniform(ks[8], big, jnp.float32) * (
        jax.random.uniform(ks[9], big) > 0.5).astype(jnp.float32)
    out_big = jax.block_until_ready(weighted_mse_loss(pred3, targ3, w3))
    ref_big = jax.block_until_ready(_reference(pred3, targ3, w3))
    assert jnp.allclose(out_big, ref_big, rtol=1e-4, atol=1e-6), (out_big, ref_big)

    print("KERNEL_OK")
</pallas_src>

<mosaic_0001>
module attributes {stable_mosaic.version = 11 : i64} {
  func.func @_wmse_partials_kernel(%arg0: i32, %arg1: i32, %arg2: memref<16x128xf32, #tpu.memory_space<vmem>>, %arg3: memref<16x128xf32, #tpu.memory_space<vmem>>, %arg4: memref<16x128xf32, #tpu.memory_space<vmem>>, %arg5: memref<1x4x128xf32, #tpu.memory_space<vmem>>) attributes {dimension_semantics = [#tpu.dimension_semantics<parallel>, #tpu.dimension_semantics<arbitrary>], iteration_bounds = array<i64: 1, 1>, scalar_prefetch = 0 : i64, scratch_operands = 0 : i64, tpu.core_type = #tpu.core_type<tc>, window_params = [{transform_indices = @transform_0, window_bounds = array<i64: 16, 128>}, {transform_indices = @transform_1, window_bounds = array<i64: 16, 128>}, {transform_indices = @transform_2, window_bounds = array<i64: 16, 128>}, {transform_indices = @transform_3, window_bounds = array<i64: 1, 4, 128>}]} {
    %c0_i32 = arith.constant 0 : i32
    %0 = arith.cmpi eq, %arg1, %c0_i32 : i32
    %1 = arith.extui %0 : i1 to i32
    %c0_i32_0 = arith.constant 0 : i32
    %2 = arith.cmpi ne, %1, %c0_i32_0 : i32
    scf.if %2 {
      %cst_32 = arith.constant 0.000000e+00 : f32
      %50 = vector.broadcast %cst_32 : f32 to vector<4x128xf32>
      %c0_33 = arith.constant 0 : index
      %c0_34 = arith.constant 0 : index
      %c0_35 = arith.constant 0 : index
      %51 = vector.load %arg5[%c0_33, %c0_34, %c0_35] : memref<1x4x128xf32, #tpu.memory_space<vmem>>, vector<1x4x128xf32>
      %52 = vector.shape_cast %51 : vector<1x4x128xf32> to vector<4x128xf32>
      %53 = vector.shape_cast %50 : vector<4x128xf32> to vector<1x4x128xf32>
      tpu.vector_store %arg5[%c0_33, %c0_34, %c0_35], %53 {strides = array<i32>} : memref<1x4x128xf32, #tpu.memory_space<vmem>>, vector<1x4x128xf32>,
    } else {
    }
    %c0 = arith.constant 0 : index
    %c0_1 = arith.constant 0 : index
    %3 = vector.load %arg2[%c0, %c0_1] : memref<16x128xf32, #tpu.memory_space<vmem>>, vector<16x128xf32>
    %c0_2 = arith.constant 0 : index
    %c0_3 = arith.constant 0 : index
    %4 = vector.load %arg3[%c0_2, %c0_3] : memref<16x128xf32, #tpu.memory_space<vmem>>, vector<16x128xf32>
    %c0_4 = arith.constant 0 : index
    %c0_5 = arith.constant 0 : index
    %5 = vector.load %arg4[%c0_4, %c0_5] : memref<16x128xf32, #tpu.memory_space<vmem>>, vector<16x128xf32>
    %6 = arith.subf %3, %4 : vector<16x128xf32>
    %7 = arith.mulf %5, %6 : vector<16x128xf32>
    %8 = arith.mulf %7, %6 : vector<16x128xf32>
    %cst = arith.constant 0.000000e+00 : f32
    %9 = vector.broadcast %cst : f32 to vector<16x128xf32>
    %10 = arith.cmpf ogt, %5, %9 : vector<16x128xf32>
    %11 = arith.extui %10 : vector<16x128xi1> to vector<16x128xi32>
    %12 = arith.sitofp %11 : vector<16x128xi32> to vector<16x128xf32>
    %cst_6 = arith.constant 0.000000e+00 : f32
    %13 = vector.broadcast %cst_6 : f32 to vector<16x128xf32>
    %14 = arith.cmpf one, %8, %13 : vector<16x128xf32>
    %15 = arith.extui %14 : vector<16x128xi1> to vector<16x128xi32>
    %16 = arith.sitofp %15 : vector<16x128xi32> to vector<16x128xf32>
    %c0_7 = arith.constant 0 : index
    %c0_8 = arith.constant 0 : index
    %c0_9 = arith.constant 0 : index
    %17 = vector.load %arg5[%c0_7, %c0_8, %c0_9] : memref<1x4x128xf32, #tpu.memory_space<vmem>>, vector<1x1x128xf32>
    %18 = vector.shape_cast %17 : vector<1x1x128xf32> to vector<1x128xf32>
    %19 = arith.mulf %8, %12 : vector<16x128xf32>
    %cst_10 = arith.constant dense<0.000000e+00> : vector<128xf32>
    %20 = vector.multi_reduction <add>, %19, %cst_10 [0] : vector<16x128xf32> to vector<128xf32>
    %21 = vector.shape_cast %20 : vector<128xf32> to vector<1x128xf32>
    %22 = arith.addf %18, %21 : vector<1x128xf32>
    %c0_11 = arith.constant 0 : index
    %c0_12 = arith.constant 0 : index
    %c0_13 = arith.constant 0 : index
    %23 = vector.load %arg5[%c0_11, %c0_12, %c0_13] : memref<1x4x128xf32, #tpu.memory_space<vmem>>, vector<1x1x128xf32>
    %24 = vector.shape_cast %23 : vector<1x1x128xf32> to vector<1x128xf32>
    %25 = vector.shape_cast %22 : vector<1x128xf32> to vector<1x1x128xf32>
    tpu.vector_store %arg5[%c0_11, %c0_12, %c0_13], %25 {strides = array<i32>} : memref<1x4x128xf32, #tpu.memory_space<vmem>>, vector<1x1x128xf32>,
    %c0_14 = arith.constant 0 : index
    %c1 = arith.constant 1 : index
    %c0_15 = arith.constant 0 : index
    %26 = vector.load %arg5[%c0_14, %c1, %c0_15] : memref<1x4x128xf32, #tpu.memory_space<vmem>>, vector<1x1x128xf32>
    %27 = vector.shape_cast %26 : vector<1x1x128xf32> to vector<1x128xf32>
    %cst_16 = arith.constant dense<0.000000e+00> : vector<128xf32>
    %28 = vector.multi_reduction <add>, %12, %cst_16 [0] : vector<16x128xf32> to vector<128xf32>
    %29 = vector.shape_cast %28 : vector<128xf32> to vector<1x128xf32>
    %30 = arith.addf %27, %29 : vector<1x128xf32>
    %c0_17 = arith.constant 0 : index
    %c1_18 = arith.constant 1 : index
    %c0_19 = arith.constant 0 : index
    %31 = vector.load %arg5[%c0_17, %c1_18, %c0_19] : memref<1x4x128xf32, #tpu.memory_space<vmem>>, vector<1x1x128xf32>
    %32 = vector.shape_cast %31 : vector<1x1x128xf32> to vector<1x128xf32>
    %33 = vector.shape_cast %30 : vector<1x128xf32> to vector<1x1x128xf32>
    tpu.vector_store %arg5[%c0_17, %c1_18, %c0_19], %33 {strides = array<i32>} : memref<1x4x128xf32, #tpu.memory_space<vmem>>, vector<1x1x128xf32>,
    %c0_20 = arith.constant 0 : index
    %c2 = arith.constant 2 : index
    %c0_21 = arith.constant 0 : index
    %34 = vector.load %arg5[%c0_20, %c2, %c0_21] : memref<1x4x128xf32, #tpu.memory_space<vmem>>, vector<1x1x128xf32>
    %35 = vector.shape_cast %34 : vector<1x1x128xf32> to vector<1x128xf32>
    %cst_22 = arith.constant dense<0.000000e+00> : vector<128xf32>
    %36 = vector.multi_reduction <add>, %16, %cst_22 [0] : vector<16x128xf32> to vector<128xf32>
    %37 = vector.shape_cast %36 : vector<128xf32> to vector<1x128xf32>
    %38 = arith.addf %35, %37 : vector<1x128xf32>
    %c0_23 = arith.constant 0 : index
    %c2_24 = arith.constant 2 : index
    %c0_25 = arith.constant 0 : index
    %39 = vector.load %arg5[%c0_23, %c2_24, %c0_25] : memref<1x4x128xf32, #tpu.memory_space<vmem>>, vector<1x1x128xf32>
    %40 = vector.shape_cast %39 : vector<1x1x128xf32> to vector<1x128xf32>
    %41 = vector.shape_cast %38 : vector<1x128xf32> to vector<1x1x128xf32>
    tpu.vector_store %arg5[%c0_23, %c2_24, %c0_25], %41 {strides = array<i32>} : memref<1x4x128xf32, #tpu.memory_space<vmem>>, vector<1x1x128xf32>,
    %c0_26 = arith.constant 0 : index
    %c3 = arith.constant 3 : index
    %c0_27 = arith.constant 0 : index
    %42 = vector.load %arg5[%c0_26, %c3, %c0_27] : memref<1x4x128xf32, #tpu.memory_space<vmem>>, vector<1x1x128xf32>
    %43 = vector.shape_cast %42 : vector<1x1x128xf32> to vector<1x128xf32>
    %cst_28 = arith.constant dense<0.000000e+00> : vector<128xf32>
    %44 = vector.multi_reduction <add>, %8, %cst_28 [0] : vector<16x128xf32> to vector<128xf32>
    %45 = vector.shape_cast %44 : vector<128xf32> to vector<1x128xf32>
    %46 = arith.addf %43, %45 : vector<1x128xf32>
    %c0_29 = arith.constant 0 : index
    %c3_30 = arith.constant 3 : index
    %c0_31 = arith.constant 0 : index
    %47 = vector.load %arg5[%c0_29, %c3_30, %c0_31] : memref<1x4x128xf32, #tpu.memory_space<vmem>>, vector<1x1x128xf32>
    %48 = vector.shape_cast %47 : vector<1x1x128xf32> to vector<1x128xf32>
    %49 = vector.shape_cast %46 : vector<1x128xf32> to vector<1x1x128xf32>
    tpu.vector_store %arg5[%c0_29, %c3_30, %c0_31], %49 {strides = array<i32>} : memref<1x4x128xf32, #tpu.memory_space<vmem>>, vector<1x1x128xf32>,
    return
  }
  func.func @transform_0(%arg0: i32, %arg1: i32) -> (i32, i32) {
    %c1_i32 = arith.constant 1 : i32
    %0 = arith.muli %arg0, %c1_i32 : i32
    %1 = arith.addi %0, %arg1 : i32
    %c0_i32 = arith.constant 0 : i32
    %c0_i32_0 = arith.constant 0 : i32
    return %1, %c0_i32 : i32, i32
  }
  func.func @transform_1(%arg0: i32, %arg1: i32) -> (i32, i32) {
    %c1_i32 = arith.constant 1 : i32
    %0 = arith.muli %arg0, %c1_i32 : i32
    %1 = arith.addi %0, %arg1 : i32
    %c0_i32 = arith.constant 0 : i32
    %c0_i32_0 = arith.constant 0 : i32
    return %1, %c0_i32 : i32, i32
  }
  func.func @transform_2(%arg0: i32, %arg1: i32) -> (i32, i32) {
    %c1_i32 = arith.constant 1 : i32
    %0 = arith.muli %arg0, %c1_i32 : i32
    %1 = arith.addi %0, %arg1 : i32
    %c0_i32 = arith.constant 0 : i32
    %c0_i32_0 = arith.constant 0 : i32
    return %1, %c0_i32 : i32, i32
  }
  func.func @transform_3(%arg0: i32, %arg1: i32) -> (i32, i32, i32) {
    %c0_i32 = arith.constant 0 : i32
    %c0_i32_0 = arith.constant 0 : i32
    %c0_i32_1 = arith.constant 0 : i32
    return %arg0, %c0_i32, %c0_i32_0 : i32, i32, i32
  }
}

</mosaic_0001>

<bundles_post_ra>
// kernel: weighted_mse_loss.2
= control target key start
LH: loop header
LB: loop body
LE: loop exit
PB: predicated region body
PF: predicated region fallthrough
CT: control target
= control target key end

     0   :  { %v178_v0 = vmov 0.0   ;;  %s244_s0 = inlined_call_operand.vmem [shape: f32[16,128], index: 0, kind: input, shape index: {}]   ;;  %s245_s1 = inlined_call_operand.vmem [shape: f32[16,128], index: 1, kind: input, shape index: {}]   ;;  %s246_s2 = inlined_call_operand.vmem [shape: f32[16,128], index: 2, kind: input, shape index: {}]   ;;  %s247_s3 = inlined_call_operand.vmem [shape: f32[1,4,128], index: 3, kind: output, shape index: {}]  }
   0x1   :  { %84 = vst [vmem:[%s247_s3] sm:$0xf] %v178_v0  ;;  %v85_v1 = vld [vmem:[%s244_s0] sm:$0xff]  ;;  %v86_v2 = vld [vmem:[%s244_s0 + $0x8] sm:$0xff] }
   0x2   :  { %v87_v3 = vld [vmem:[%s245_s1] sm:$0xff]  ;;  %v88_v4 = vld [vmem:[%s245_s1 + $0x8] sm:$0xff] }
   0x3   :  { %v89_v5 = vld [vmem:[%s246_s2] sm:$0xff]  ;;  %v90_v6 = vld [vmem:[%s246_s2 + $0x8] sm:$0xff]  ;;  %v91_v7 = vsub.f32 %v85_v1, %v87_v3  ;;  %v92_v8 = vsub.f32 %v86_v2, %v88_v4 }
   0x4   :  { %vm97_vm0 = vcmp.gt.f32.partialorder %v89_v5, 0.0  ;;  %vm98_vm1 = vcmp.gt.f32.partialorder %v90_v6, 0.0 }
   0x5   :  { %v93_v9 = vmul.f32 %v91_v7, %v89_v5  ;;  %v173_v10 = vsel %vm97_vm0, 1.0, %v178_v0  ;;  %v174_v11 = vsel %vm98_vm1, 1.0, %v178_v0  ;;  %v94_v12 = vmul.f32 %v92_v8, %v90_v6 }
   0x6   :  { %v122_v13 = vadd.f32 %v174_v11, %v173_v10 }
   0x7   :  { %v95_v14 = vmul.f32 %v93_v9, %v91_v7  ;;  %v96_v15 = vmul.f32 %v94_v12, %v92_v8 }
   0x8   :  { %v123_v16 = vrot.slane %v122_v13, 4  ;;  %v121_v34 = vld [vmem:[%s247_s3 + $0x1] sm:$0x1]  ;;  %v141_v46 = vld [vmem:[%s247_s3 + $0x3] sm:$0x1] }
   0x9   :  { %vm103_vm2 = vcmp.ne.f32.partialorder %v95_v14, 0.0  ;;  %v110_v17 = vmul.f32 %v173_v10, %v95_v14  ;;  %vm104_vm3 = vcmp.ne.f32.partialorder %v96_v15, 0.0  ;;  %v111_v19 = vmul.f32 %v174_v11, %v96_v15  ;;  %v109_v47 = vld [vmem:[%s247_s3] sm:$0x1]  ;;  %v131_v48 = vld [vmem:[%s247_s3 + $0x2] sm:$0x1] }
   0xa   :  { %v175_v18 = vsel %vm103_vm2, 1.0, %v178_v0  ;;  %v124_v20 = vadd.f32 %v123_v16, %v122_v13  ;;  %v176_v21 = vsel %vm104_vm3, 1.0, %v178_v0  ;;  %v142_v22 = vadd.f32 %v96_v15, %v95_v14 }
   0xb   :  { %v112_v23 = vadd.f32 %v111_v19, %v110_v17  ;;  %v132_v25 = vadd.f32 %v176_v21, %v175_v18 }
   0xc   :  { %v125_v24 = vrot.slane %v124_v20, 2  ;;  %v143_v26 = vrot.slane %v142_v22, 4 }
   0xd   :  { %v113_v27 = vrot.slane %v112_v23, 4  ;;  %v133_v29 = vrot.slane %v132_v25, 4 }
   0xe   :  { %v126_v28 = vadd.f32 %v125_v24, %v124_v20  ;;  %v144_v30 = vadd.f32 %v143_v26, %v142_v22 }
   0xf   :  { %v114_v31 = vadd.f32 %v113_v27, %v112_v23  ;;  %v134_v33 = vadd.f32 %v133_v29, %v132_v25 }
  0x10   :  { %v127_v32 = vrot.slane %v126_v28, 1  ;;  %v145_v35 = vrot.slane %v144_v30, 2 }
  0x11   :  { %v115_v36 = vrot.slane %v114_v31, 2  ;;  %v135_v38 = vrot.slane %v134_v33, 2 }
  0x12   :  { %v128_v37 = vadd.f32 %v127_v32, %v126_v28  ;;  %v146_v39 = vadd.f32 %v145_v35, %v144_v30 }
  0x13   :  { %v116_v40 = vadd.f32 %v115_v36, %v114_v31  ;;  %v136_v42 = vadd.f32 %v135_v38, %v134_v33 }
  0x14   :  { %v129_v41 = vadd.f32 %v128_v37, %v121_v34  ;;  %v147_v43 = vrot.slane %v146_v39, 1 }
  0x15   :  { %v117_v44 = vrot.slane %v116_v40, 1  ;;  %v137_v45 = vrot.slane %v136_v42, 1 }
  0x16   :  { %130 = vst [vmem:[%s247_s3 + $0x1] sm:$0x1] %v129_v41  ;;  %v148_v49 = vadd.f32 %v147_v43, %v146_v39 }
  0x17   :  { %v118_v50 = vadd.f32 %v117_v44, %v116_v40  ;;  %v138_v51 = vadd.f32 %v137_v45, %v136_v42 }
  0x18   :  { %v149_v52 = vadd.f32 %v148_v49, %v141_v46 }
  0x19   :  { %v119_v53 = vadd.f32 %v118_v50, %v109_v47  ;;  %v139_v54 = vadd.f32 %v138_v51, %v131_v48 }
  0x1a   :  { %150 = vst [vmem:[%s247_s3 + $0x3] sm:$0x1] %v149_v52 }
  0x1b   :  { %120 = vst [vmem:[%s247_s3] sm:$0x1] %v119_v53  ;;  %140 = vst [vmem:[%s247_s3 + $0x2] sm:$0x1] %v139_v54 }

</bundles_post_ra>
